<compile_context>
chip_gen: v5e
topology: v5e:2x2
jax: 0.10.0
libtpu: 0.0.40
codegen_flags: <defaults>
</compile_context>

<pallas_src>
import jax
import jax.numpy as jnp
from jax.experimental import pallas as pl
from jax.experimental.pallas import tpu as pltpu


def _round_up(x, m):
    return (x + m - 1) // m * m


# ----------------------------- Pallas kernel ------------------------------ #
def _critic_kernel(gs_ref, gov_ref, mh_ref, priv_ref, hou_ref,
                   w1g_ref, w1p_ref, w1gov_ref, w1hou_ref, w1mh_ref, b1_ref,
                   w2_ref, b2_ref, wq_ref, bq_ref, out_ref):
    f32 = jnp.float32
    bf16 = jnp.bfloat16

    # fc1 contribution of the per-batch (broadcast) features: computed once per
    # batch tile instead of once per agent row.  Shape (1, H), f32 accumulate.
    shared = (
        jnp.dot(gs_ref[...].astype(bf16), w1g_ref[...], preferred_element_type=f32)
        + jnp.dot(gov_ref[...].astype(bf16), w1gov_ref[...], preferred_element_type=f32)
        + jnp.dot(mh_ref[...].astype(bf16), w1mh_ref[...], preferred_element_type=f32)
        + b1_ref[...]
    )

    # fc1 contribution of the per-agent features.  Shape (TILE_A, H).
    agent = (
        jnp.dot(priv_ref[...].astype(bf16), w1p_ref[...], preferred_element_type=f32)
        + jnp.dot(hou_ref[...].astype(bf16), w1hou_ref[...], preferred_element_type=f32)
    )

    h = jnp.maximum(agent + shared, 0.0)                       # relu(fc1)

    h = jnp.dot(h.astype(bf16), w2_ref[...], preferred_element_type=f32) + b2_ref[...]
    h = jnp.maximum(h, 0.0)                                    # relu(fc2)

    out_ref[...] = (jnp.dot(h.astype(bf16), wq_ref[...], preferred_element_type=f32)
                    + bq_ref[...])                             # q_value


# ------------------------------ Pallas wrapper ----------------------------- #
def mf_shared_critic_forward(params, global_state, private_state, gov_action,
                             hou_action, mean_house_action, num_agent):
    """Semantics of MFSharedCritic.forward.

    global_state:      (B, G)
    private_state:     (B, num_agent, P)
    gov_action:        (B, GA)
    hou_action:        (B, num_agent, HA)
    mean_house_action: (B, HA)
    Returns q: (B, num_agent, 1) float32.
    """
    B = private_state.shape[0]
    G = global_state.shape[-1]
    P = private_state.shape[-1]
    GA = gov_action.shape[-1]
    HA = hou_action.shape[-1]
    H = params["w2"].shape[0]

    # unsqueeze(1) equivalents -- broadcast inputs stay UNREPLICATED; the kernel
    # broadcasts their fc1 contribution over agents (no jnp.tile / concat).
    gs3 = global_state.reshape(B, 1, G).astype(jnp.float32)
    gov3 = gov_action.reshape(B, 1, GA).astype(jnp.float32)
    mh3 = mean_house_action.reshape(B, 1, HA).astype(jnp.float32)
    priv = private_state.astype(jnp.float32)
    hou = hou_action.astype(jnp.float32)

    # Split fc1 weight by the concat order of the reference module:
    # [global, private, gov, hou, mean_house].  Matmul weights stored bf16.
    w1 = params["w1"].astype(jnp.bfloat16)
    w1_g = w1[:G]
    w1_p = w1[G:G + P]
    w1_gov = w1[G + P:G + P + GA]
    w1_hou = w1[G + P + GA:G + P + GA + HA]
    w1_mh = w1[G + P + GA + HA:]
    b1 = params["b1"].astype(jnp.float32)
    w2 = params["w2"].astype(jnp.bfloat16)
    b2 = params["b2"].astype(jnp.float32)
    wq = params["wq"].astype(jnp.bfloat16)
    bq = params["bq"].astype(jnp.float32)

    # Pad the agent axis so the agent tile obeys the (8,128) sublane rule.
    na = num_agent
    na_pad = _round_up(max(na, 1), 8)
    tile_a = min(na_pad, 512)
    na_pad = _round_up(na_pad, tile_a)
    if na_pad != na:
        pad = ((0, 0), (0, na_pad - na), (0, 0))
        priv = jnp.pad(priv, pad)
        hou = jnp.pad(hou, pad)

    grid = (B, na_pad // tile_a)

    def resident(arr):
        # Whole-array block, constant index -> DMA'd once, resident in VMEM.
        return pl.BlockSpec(arr.shape, lambda b, a: (0, 0))

    in_specs = [
        pl.BlockSpec((None, 1, G), lambda b, a: (b, 0, 0)),       # global_state
        pl.BlockSpec((None, 1, GA), lambda b, a: (b, 0, 0)),      # gov_action
        pl.BlockSpec((None, 1, HA), lambda b, a: (b, 0, 0)),      # mean_house_action
        pl.BlockSpec((None, tile_a, P), lambda b, a: (b, a, 0)),  # private_state
        pl.BlockSpec((None, tile_a, HA), lambda b, a: (b, a, 0)), # hou_action
        resident(w1_g), resident(w1_p), resident(w1_gov),
        resident(w1_hou), resident(w1_mh), resident(b1),
        resident(w2), resident(b2), resident(wq), resident(bq),
    ]
    out_spec = pl.BlockSpec((None, tile_a, 1), lambda b, a: (b, a, 0))

    d_in = G + P + GA + 2 * HA
    flops = 2 * B * na_pad * (d_in * H + H * H + H)
    bytes_accessed = (4 * (B * (G + GA + HA) + B * na_pad * (P + HA + 1))
                      + 2 * (d_in * H + H * H + H) + 4 * (2 * H + 1))

    q = pl.pallas_call(
        _critic_kernel,
        out_shape=jax.ShapeDtypeStruct((B, na_pad, 1), jnp.float32),
        grid_spec=pltpu.PrefetchScalarGridSpec(
            num_scalar_prefetch=0,
            grid=grid,
            in_specs=in_specs,
            out_specs=out_spec,
        ),
        compiler_params=pltpu.CompilerParams(
            dimension_semantics=("parallel", "parallel"),
            vmem_limit_bytes=32 * 1024 * 1024,
        ),
        cost_estimate=pl.CostEstimate(
            flops=int(flops),
            transcendentals=0,
            bytes_accessed=int(bytes_accessed),
        ),
    )(gs3, gov3, mh3, priv, hou,
      w1_g, w1_p, w1_gov, w1_hou, w1_mh, b1, w2, b2, wq, bq)

    return q[:, :na, :]


# ------------------------------ Params / reference ------------------------- #
def init_params(key, state_dim, gov_action_dim, hou_action_dim, hidden_size):
    """PyTorch-nn.Linear-style init: U[-1/sqrt(fan_in), 1/sqrt(fan_in)]."""
    d_in = state_dim + gov_action_dim + 2 * hou_action_dim

    def linear(k, fan_in, fan_out):
        kw, kb = jax.random.split(k)
        bound = 1.0 / (fan_in ** 0.5)
        w = jax.random.uniform(kw, (fan_in, fan_out), jnp.float32, -bound, bound)
        b = jax.random.uniform(kb, (1, fan_out), jnp.float32, -bound, bound)
        return w, b

    k1, k2, k3 = jax.random.split(key, 3)
    w1, b1 = linear(k1, d_in, hidden_size)
    w2, b2 = linear(k2, hidden_size, hidden_size)
    wq, bq = linear(k3, hidden_size, 1)
    return dict(w1=w1, b1=b1, w2=w2, b2=b2, wq=wq, bq=bq)


def reference_forward(params, global_state, private_state, gov_action,
                      hou_action, mean_house_action, num_agent):
    """Pure-JAX reference matching the PyTorch module (same bf16 matmul casts)."""
    n_g = jnp.tile(global_state[:, None, :], (1, num_agent, 1))
    n_gov = jnp.tile(gov_action[:, None, :], (1, num_agent, 1))
    n_mh = jnp.tile(mean_house_action[:, None, :], (1, num_agent, 1))
    x = jnp.concatenate([n_g, private_state, n_gov, hou_action, n_mh], axis=-1)
    bf = jnp.bfloat16
    f32 = jnp.float32
    w1 = params["w1"].astype(bf)
    w2 = params["w2"].astype(bf)
    wq = params["wq"].astype(bf)
    h = jnp.maximum(jnp.dot(x.astype(bf), w1, preferred_element_type=f32) + params["b1"], 0.0)
    h = jnp.maximum(jnp.dot(h.astype(bf), w2, preferred_element_type=f32) + params["b2"], 0.0)
    return jnp.dot(h.astype(bf), wq, preferred_element_type=f32) + params["bq"]


# --------------------------------- main ------------------------------------ #
if __name__ == "__main__":
    B = 2
    NUM_AGENT = 4
    G_DIM = 6            # global obs dim
    P_DIM = 2            # private obs dim
    GOV_ACT_DIM = 5
    HOUSE_ACT_DIM = 2
    STATE_DIM = G_DIM + P_DIM          # fc1 in = state_dim + gov + 2*hou = 17
    HIDDEN = 128

    key = jax.random.PRNGKey(0)
    kp, kg, kpr, kgo, kh, km = jax.random.split(key, 6)

    params = init_params(kp, STATE_DIM, GOV_ACT_DIM, HOUSE_ACT_DIM, HIDDEN)

    global_state = jax.random.normal(kg, (B, G_DIM), jnp.float32)
    private_state = jax.random.normal(kpr, (B, NUM_AGENT, P_DIM), jnp.float32)
    gov_action = jax.random.normal(kgo, (B, GOV_ACT_DIM), jnp.float32)
    hou_action = jax.random.normal(kh, (B, NUM_AGENT, HOUSE_ACT_DIM), jnp.float32)
    mean_house_action = jax.random.normal(km, (B, HOUSE_ACT_DIM), jnp.float32)

    q = mf_shared_critic_forward(params, global_state, private_state, gov_action,
                                 hou_action, mean_house_action, NUM_AGENT)
    q = jax.block_until_ready(q)

    assert q.shape == (B, NUM_AGENT, 1)
    assert bool(jnp.all(jnp.isfinite(q)))

    q_ref = reference_forward(params, global_state, private_state, gov_action,
                              hou_action, mean_house_action, NUM_AGENT)
    assert bool(jnp.allclose(q, q_ref, atol=1e-2, rtol=1e-2))

    print("KERNEL_OK")
</pallas_src>

<mosaic_0001>
module attributes {stable_mosaic.version = 11 : i64} {
  func.func @_critic_kernel(%arg0: i32, %arg1: i32, %arg2: memref<1x1x6xf32, #tpu.memory_space<vmem>>, %arg3: memref<1x1x5xf32, #tpu.memory_space<vmem>>, %arg4: memref<1x1x2xf32, #tpu.memory_space<vmem>>, %arg5: memref<1x8x2xf32, #tpu.memory_space<vmem>>, %arg6: memref<1x8x2xf32, #tpu.memory_space<vmem>>, %arg7: memref<6x128xbf16, #tpu.memory_space<vmem>>, %arg8: memref<2x128xbf16, #tpu.memory_space<vmem>>, %arg9: memref<5x128xbf16, #tpu.memory_space<vmem>>, %arg10: memref<2x128xbf16, #tpu.memory_space<vmem>>, %arg11: memref<2x128xbf16, #tpu.memory_space<vmem>>, %arg12: memref<1x128xf32, #tpu.memory_space<vmem>>, %arg13: memref<128x128xbf16, #tpu.memory_space<vmem>>, %arg14: memref<1x128xf32, #tpu.memory_space<vmem>>, %arg15: memref<128x1xbf16, #tpu.memory_space<vmem>>, %arg16: memref<1x1xf32, #tpu.memory_space<vmem>>, %arg17: memref<1x8x1xf32, #tpu.memory_space<vmem>>) attributes {dimension_semantics = [#tpu.dimension_semantics<parallel>, #tpu.dimension_semantics<parallel>], iteration_bounds = array<i64: 2, 1>, scalar_prefetch = 0 : i64, scratch_operands = 0 : i64, tpu.core_type = #tpu.core_type<tc>, window_params = [{transform_indices = @transform_0, window_bounds = array<i64: 1, 1, 6>}, {transform_indices = @transform_1, window_bounds = array<i64: 1, 1, 5>}, {transform_indices = @transform_2, window_bounds = array<i64: 1, 1, 2>}, {transform_indices = @transform_3, window_bounds = array<i64: 1, 8, 2>}, {transform_indices = @transform_4, window_bounds = array<i64: 1, 8, 2>}, {pipeline_mode = #tpu.pipeline_mode<synchronous>, transform_indices = @transform_5, window_bounds = array<i64: 6, 128>}, {pipeline_mode = #tpu.pipeline_mode<synchronous>, transform_indices = @transform_6, window_bounds = array<i64: 2, 128>}, {pipeline_mode = #tpu.pipeline_mode<synchronous>, transform_indices = @transform_7, window_bounds = array<i64: 5, 128>}, {pipeline_mode = #tpu.pipeline_mode<synchronous>, transform_indices = @transform_8, window_bounds = array<i64: 2, 128>}, {pipeline_mode = #tpu.pipeline_mode<synchronous>, transform_indices = @transform_9, window_bounds = array<i64: 2, 128>}, {pipeline_mode = #tpu.pipeline_mode<synchronous>, transform_indices = @transform_10, window_bounds = array<i64: 1, 128>}, {pipeline_mode = #tpu.pipeline_mode<synchronous>, transform_indices = @transform_11, window_bounds = array<i64: 128, 128>}, {pipeline_mode = #tpu.pipeline_mode<synchronous>, transform_indices = @transform_12, window_bounds = array<i64: 1, 128>}, {pipeline_mode = #tpu.pipeline_mode<synchronous>, transform_indices = @transform_13, window_bounds = array<i64: 128, 1>}, {pipeline_mode = #tpu.pipeline_mode<synchronous>, transform_indices = @transform_14, window_bounds = array<i64: 1, 1>}, {transform_indices = @transform_15, window_bounds = array<i64: 1, 8, 1>}]} {
    %c0 = arith.constant 0 : index
    %c0_0 = arith.constant 0 : index
    %c0_1 = arith.constant 0 : index
    %0 = vector.load %arg2[%c0, %c0_0, %c0_1] : memref<1x1x6xf32, #tpu.memory_space<vmem>>, vector<1x1x6xf32>
    %1 = vector.shape_cast %0 : vector<1x1x6xf32> to vector<1x6xf32>
    %2 = arith.truncf %1 : vector<1x6xf32> to vector<1x6xbf16>
    %c0_2 = arith.constant 0 : index
    %c0_3 = arith.constant 0 : index
    %3 = vector.load %arg7[%c0_2, %c0_3] : memref<6x128xbf16, #tpu.memory_space<vmem>>, vector<6x128xbf16>
    %cst = arith.constant dense<0.000000e+00> : vector<1x128xf32>
    %4 = tpu.matmul %2, %3, %cst {dimension_numbers = #tpu.dot_dimension_numbers<[1], [0], [0], [1], [0, 0, 1, 1], [], []>} : vector<1x6xbf16>, vector<6x128xbf16>, vector<1x128xf32> -> vector<1x128xf32>
    %c0_4 = arith.constant 0 : index
    %c0_5 = arith.constant 0 : index
    %c0_6 = arith.constant 0 : index
    %5 = vector.load %arg3[%c0_4, %c0_5, %c0_6] : memref<1x1x5xf32, #tpu.memory_space<vmem>>, vector<1x1x5xf32>
    %6 = vector.shape_cast %5 : vector<1x1x5xf32> to vector<1x5xf32>
    %7 = arith.truncf %6 : vector<1x5xf32> to vector<1x5xbf16>
    %c0_7 = arith.constant 0 : index
    %c0_8 = arith.constant 0 : index
    %8 = vector.load %arg9[%c0_7, %c0_8] : memref<5x128xbf16, #tpu.memory_space<vmem>>, vector<5x128xbf16>
    %cst_9 = arith.constant dense<0.000000e+00> : vector<1x128xf32>
    %9 = tpu.matmul %7, %8, %cst_9 {dimension_numbers = #tpu.dot_dimension_numbers<[1], [0], [0], [1], [0, 0, 1, 1], [], []>} : vector<1x5xbf16>, vector<5x128xbf16>, vector<1x128xf32> -> vector<1x128xf32>
    %10 = arith.addf %4, %9 : vector<1x128xf32>
    %c0_10 = arith.constant 0 : index
    %c0_11 = arith.constant 0 : index
    %c0_12 = arith.constant 0 : index
    %11 = vector.load %arg4[%c0_10, %c0_11, %c0_12] : memref<1x1x2xf32, #tpu.memory_space<vmem>>, vector<1x1x2xf32>
    %12 = vector.shape_cast %11 : vector<1x1x2xf32> to vector<1x2xf32>
    %13 = arith.truncf %12 : vector<1x2xf32> to vector<1x2xbf16>
    %c0_13 = arith.constant 0 : index
    %c0_14 = arith.constant 0 : index
    %14 = vector.load %arg11[%c0_13, %c0_14] : memref<2x128xbf16, #tpu.memory_space<vmem>>, vector<2x128xbf16>
    %cst_15 = arith.constant dense<0.000000e+00> : vector<1x128xf32>
    %15 = tpu.matmul %13, %14, %cst_15 {dimension_numbers = #tpu.dot_dimension_numbers<[1], [0], [0], [1], [0, 0, 1, 1], [], []>} : vector<1x2xbf16>, vector<2x128xbf16>, vector<1x128xf32> -> vector<1x128xf32>
    %16 = arith.addf %10, %15 : vector<1x128xf32>
    %c0_16 = arith.constant 0 : index
    %c0_17 = arith.constant 0 : index
    %17 = vector.load %arg12[%c0_16, %c0_17] : memref<1x128xf32, #tpu.memory_space<vmem>>, vector<1x128xf32>
    %18 = arith.addf %16, %17 : vector<1x128xf32>
    %c0_18 = arith.constant 0 : index
    %c0_19 = arith.constant 0 : index
    %c0_20 = arith.constant 0 : index
    %19 = vector.load %arg5[%c0_18, %c0_19, %c0_20] : memref<1x8x2xf32, #tpu.memory_space<vmem>>, vector<1x8x2xf32>
    %20 = vector.shape_cast %19 : vector<1x8x2xf32> to vector<8x2xf32>
    %21 = arith.truncf %20 : vector<8x2xf32> to vector<8x2xbf16>
    %c0_21 = arith.constant 0 : index
    %c0_22 = arith.constant 0 : index
    %22 = vector.load %arg8[%c0_21, %c0_22] : memref<2x128xbf16, #tpu.memory_space<vmem>>, vector<2x128xbf16>
    %cst_23 = arith.constant dense<0.000000e+00> : vector<8x128xf32>
    %23 = tpu.matmul %21, %22, %cst_23 {dimension_numbers = #tpu.dot_dimension_numbers<[1], [0], [0], [1], [0, 0, 1, 1], [], []>} : vector<8x2xbf16>, vector<2x128xbf16>, vector<8x128xf32> -> vector<8x128xf32>
    %c0_24 = arith.constant 0 : index
    %c0_25 = arith.constant 0 : index
    %c0_26 = arith.constant 0 : index
    %24 = vector.load %arg6[%c0_24, %c0_25, %c0_26] : memref<1x8x2xf32, #tpu.memory_space<vmem>>, vector<1x8x2xf32>
    %25 = vector.shape_cast %24 : vector<1x8x2xf32> to vector<8x2xf32>
    %26 = arith.truncf %25 : vector<8x2xf32> to vector<8x2xbf16>
    %c0_27 = arith.constant 0 : index
    %c0_28 = arith.constant 0 : index
    %27 = vector.load %arg10[%c0_27, %c0_28] : memref<2x128xbf16, #tpu.memory_space<vmem>>, vector<2x128xbf16>
    %cst_29 = arith.constant dense<0.000000e+00> : vector<8x128xf32>
    %28 = tpu.matmul %26, %27, %cst_29 {dimension_numbers = #tpu.dot_dimension_numbers<[1], [0], [0], [1], [0, 0, 1, 1], [], []>} : vector<8x2xbf16>, vector<2x128xbf16>, vector<8x128xf32> -> vector<8x128xf32>
    %29 = arith.addf %23, %28 : vector<8x128xf32>
    %30 = vector.broadcast %18 : vector<1x128xf32> to vector<8x128xf32>
    %31 = arith.addf %29, %30 : vector<8x128xf32>
    %cst_30 = arith.constant 0.000000e+00 : f32
    %32 = vector.broadcast %cst_30 : f32 to vector<8x128xf32>
    %33 = arith.maximumf %31, %32 : vector<8x128xf32>
    %34 = arith.truncf %33 : vector<8x128xf32> to vector<8x128xbf16>
    %c0_31 = arith.constant 0 : index
    %c0_32 = arith.constant 0 : index
    %35 = vector.load %arg13[%c0_31, %c0_32] : memref<128x128xbf16, #tpu.memory_space<vmem>>, vector<128x128xbf16>
    %cst_33 = arith.constant dense<0.000000e+00> : vector<8x128xf32>
    %36 = tpu.matmul %34, %35, %cst_33 {dimension_numbers = #tpu.dot_dimension_numbers<[1], [0], [0], [1], [0, 0, 1, 1], [], []>} : vector<8x128xbf16>, vector<128x128xbf16>, vector<8x128xf32> -> vector<8x128xf32>
    %c0_34 = arith.constant 0 : index
    %c0_35 = arith.constant 0 : index
    %37 = vector.load %arg14[%c0_34, %c0_35] : memref<1x128xf32, #tpu.memory_space<vmem>>, vector<1x128xf32>
    %38 = vector.broadcast %37 : vector<1x128xf32> to vector<8x128xf32>
    %39 = arith.addf %36, %38 : vector<8x128xf32>
    %cst_36 = arith.constant 0.000000e+00 : f32
    %40 = vector.broadcast %cst_36 : f32 to vector<8x128xf32>
    %41 = arith.maximumf %39, %40 : vector<8x128xf32>
    %42 = arith.truncf %41 : vector<8x128xf32> to vector<8x128xbf16>
    %c0_37 = arith.constant 0 : index
    %c0_38 = arith.constant 0 : index
    %43 = vector.load %arg15[%c0_37, %c0_38] : memref<128x1xbf16, #tpu.memory_space<vmem>>, vector<128x1xbf16>
    %cst_39 = arith.constant dense<0.000000e+00> : vector<8x1xf32>
    %44 = tpu.matmul %42, %43, %cst_39 {dimension_numbers = #tpu.dot_dimension_numbers<[1], [0], [0], [1], [0, 0, 1, 1], [], []>} : vector<8x128xbf16>, vector<128x1xbf16>, vector<8x1xf32> -> vector<8x1xf32>
    %c0_40 = arith.constant 0 : index
    %c0_41 = arith.constant 0 : index
    %45 = vector.load %arg16[%c0_40, %c0_41] : memref<1x1xf32, #tpu.memory_space<vmem>>, vector<1x1xf32>
    %46 = vector.broadcast %45 : vector<1x1xf32> to vector<8x1xf32>
    %47 = arith.addf %44, %46 : vector<8x1xf32>
    %c0_42 = arith.constant 0 : index
    %c0_43 = arith.constant 0 : index
    %c0_44 = arith.constant 0 : index
    %48 = vector.load %arg17[%c0_42, %c0_43, %c0_44] : memref<1x8x1xf32, #tpu.memory_space<vmem>>, vector<1x8x1xf32>
    %49 = vector.shape_cast %48 : vector<1x8x1xf32> to vector<8x1xf32>
    %50 = vector.shape_cast %47 : vector<8x1xf32> to vector<1x8x1xf32>
    tpu.vector_store %arg17[%c0_42, %c0_43, %c0_44], %50 {strides = array<i32>} : memref<1x8x1xf32, #tpu.memory_space<vmem>>, vector<1x8x1xf32>,
    return
  }
  func.func @transform_0(%arg0: i32, %arg1: i32) -> (i32, i32, i32) {
    %c0_i32 = arith.constant 0 : i32
    %c0_i32_0 = arith.constant 0 : i32
    %c0_i32_1 = arith.constant 0 : i32
    return %arg0, %c0_i32, %c0_i32_0 : i32, i32, i32
  }
  func.func @transform_1(%arg0: i32, %arg1: i32) -> (i32, i32, i32) {
    %c0_i32 = arith.constant 0 : i32
    %c0_i32_0 = arith.constant 0 : i32
    %c0_i32_1 = arith.constant 0 : i32
    return %arg0, %c0_i32, %c0_i32_0 : i32, i32, i32
  }
  func.func @transform_2(%arg0: i32, %arg1: i32) -> (i32, i32, i32) {
    %c0_i32 = arith.constant 0 : i32
    %c0_i32_0 = arith.constant 0 : i32
    %c0_i32_1 = arith.constant 0 : i32
    return %arg0, %c0_i32, %c0_i32_0 : i32, i32, i32
  }
  func.func @transform_3(%arg0: i32, %arg1: i32) -> (i32, i32, i32) {
    %c0_i32 = arith.constant 0 : i32
    %c0_i32_0 = arith.constant 0 : i32
    return %arg0, %arg1, %c0_i32 : i32, i32, i32
  }
  func.func @transform_4(%arg0: i32, %arg1: i32) -> (i32, i32, i32) {
    %c0_i32 = arith.constant 0 : i32
    %c0_i32_0 = arith.constant 0 : i32
    return %arg0, %arg1, %c0_i32 : i32, i32, i32
  }
  func.func @transform_5(%arg0: i32, %arg1: i32) -> (i32, i32) {
    %c0_i32 = arith.constant 0 : i32
    %c0_i32_0 = arith.constant 0 : i32
    %c0_i32_1 = arith.constant 0 : i32
    return %c0_i32, %c0_i32_0 : i32, i32
  }
  func.func @transform_6(%arg0: i32, %arg1: i32) -> (i32, i32) {
    %c0_i32 = arith.constant 0 : i32
    %c0_i32_0 = arith.constant 0 : i32
    %c0_i32_1 = arith.constant 0 : i32
    return %c0_i32, %c0_i32_0 : i32, i32
  }
  func.func @transform_7(%arg0: i32, %arg1: i32) -> (i32, i32) {
    %c0_i32 = arith.constant 0 : i32
    %c0_i32_0 = arith.constant 0 : i32
    %c0_i32_1 = arith.constant 0 : i32
    return %c0_i32, %c0_i32_0 : i32, i32
  }
  func.func @transform_8(%arg0: i32, %arg1: i32) -> (i32, i32) {
    %c0_i32 = arith.constant 0 : i32
    %c0_i32_0 = arith.constant 0 : i32
    %c0_i32_1 = arith.constant 0 : i32
    return %c0_i32, %c0_i32_0 : i32, i32
  }
  func.func @transform_9(%arg0: i32, %arg1: i32) -> (i32, i32) {
    %c0_i32 = arith.constant 0 : i32
    %c0_i32_0 = arith.constant 0 : i32
    %c0_i32_1 = arith.constant 0 : i32
    return %c0_i32, %c0_i32_0 : i32, i32
  }
  func.func @transform_10(%arg0: i32, %arg1: i32) -> (i32, i32) {
    %c0_i32 = arith.constant 0 : i32
    %c0_i32_0 = arith.constant 0 : i32
    %c0_i32_1 = arith.constant 0 : i32
    return %c0_i32, %c0_i32_0 : i32, i32
  }
  func.func @transform_11(%arg0: i32, %arg1: i32) -> (i32, i32) {
    %c0_i32 = arith.constant 0 : i32
    %c0_i32_0 = arith.constant 0 : i32
    %c0_i32_1 = arith.constant 0 : i32
    return %c0_i32, %c0_i32_0 : i32, i32
  }
  func.func @transform_12(%arg0: i32, %arg1: i32) -> (i32, i32) {
    %c0_i32 = arith.constant 0 : i32
    %c0_i32_0 = arith.constant 0 : i32
    %c0_i32_1 = arith.constant 0 : i32
    return %c0_i32, %c0_i32_0 : i32, i32
  }
  func.func @transform_13(%arg0: i32, %arg1: i32) -> (i32, i32) {
    %c0_i32 = arith.constant 0 : i32
    %c0_i32_0 = arith.constant 0 : i32
    %c0_i32_1 = arith.constant 0 : i32
    return %c0_i32, %c0_i32_0 : i32, i32
  }
  func.func @transform_14(%arg0: i32, %arg1: i32) -> (i32, i32) {
    %c0_i32 = arith.constant 0 : i32
    %c0_i32_0 = arith.constant 0 : i32
    %c0_i32_1 = arith.constant 0 : i32
    return %c0_i32, %c0_i32_0 : i32, i32
  }
  func.func @transform_15(%arg0: i32, %arg1: i32) -> (i32, i32, i32) {
    %c0_i32 = arith.constant 0 : i32
    %c0_i32_0 = arith.constant 0 : i32
    return %arg0, %arg1, %c0_i32 : i32, i32, i32
  }
}

</mosaic_0001>

<bundles_post_ra>
// kernel: tpu_custom_call.1
= control target key start
LH: loop header
LB: loop body
LE: loop exit
PB: predicated region body
PF: predicated region fallthrough
CT: control target
= control target key end

     0   :  { %s1231_s20 = smov 0   ;;  %s1233_s21 = smov 0   ;;  %s1353_s0 = inlined_call_operand.vmem [shape: f32[2,1,6], index: 0, kind: input, shape index: {}]   ;;  %s1354_s1 = inlined_call_operand.vmem [shape: f32[2,1,5], index: 1, kind: input, shape index: {}]   ;;  %s1355_s2 = inlined_call_operand.vmem [shape: f32[2,1,2], index: 2, kind: input, shape index: {}]   ;;  %s1356_s3 = inlined_call_operand.vmem [shape: f32[2,8,2], index: 3, kind: input, shape index: {}]   ;;  %s1357_s4 = inlined_call_operand.vmem [shape: f32[2,8,2], index: 4, kind: input, shape index: {}]   ;;  %s1358_s5 = inlined_call_operand.vmem [shape: bf16[6,128], index: 5, kind: input, shape index: {}]   ;;  %s1359_s6 = inlined_call_operand.vmem [shape: bf16[2,128], index: 6, kind: input, shape index: {}]   ;;  %s1360_s7 = inlined_call_operand.vmem [shape: bf16[5,128], index: 7, kind: input, shape index: {}]   ;;  %s1361_s8 = inlined_call_operand.vmem [shape: bf16[2,128], index: 8, kind: input, shape index: {}]   ;;  %s1362_s9 = inlined_call_operand.vmem [shape: bf16[2,128], index: 9, kind: input, shape index: {}]   ;;  %s1363_s10 = inlined_call_operand.vmem [shape: f32[1,128], index: 10, kind: input, shape index: {}]   ;;  %s1364_s11 = inlined_call_operand.vmem [shape: bf16[128,128], index: 11, kind: input, shape index: {}]   ;;  %s1365_s12 = inlined_call_operand.vmem [shape: f32[1,128], index: 12, kind: input, shape index: {}]   ;;  %s1366_s13 = inlined_call_operand.vmem [shape: bf16[128,1], index: 13, kind: input, shape index: {}]   ;;  %s1367_s14 = inlined_call_operand.<no memory space> [shape: f32[1,1], index: 14, kind: input, shape index: {}]   ;;  %s1368_s15 = inlined_call_operand.vmem [shape: f32[2,8,1], index: 15, kind: output, shape index: {}]  }
   0x1   :  { %v20_v0 = vstv %s1367_s14  ;;  %s1235_s22 = smov 0  }
   0x2   :  { %21 = vst [vmem:[#allocation2] sm:$0x1] %v20_v0 }
   0x3 LB: > { %s39_s14 = sadd.s32 1, %s1141_s21  ;;  %p1005_p0 = scmp.ge.s32.totalorder %s1145_s22, 1  ;;  %s1145_s22 = sphi %s1235_s22, %s27_s22   ;;  %s1141_s21 = sphi %s1233_s21, %s1370_s21   ;;  %s1137_s20 = sphi %s1231_s20, %s1369_s20  }
   0x4   : > { %p41_p1 = scmp.ge.s32.totalorder %s39_s14, 2  ;;  %p495_p2 = scmp.lt.s32.totalorder %s1145_s22, 3 }
   0x6   : > { %s1372_s14 = smov (%p41_p1, %s39_s14), 0  ;;  %p496_p3 = pnand %p1005_p0, %p495_p2 }
   0x7   : > { %p563_p4 = scmp.lt.s32.totalorder (!%p496_p3), %s1137_s20, 1 }
   0x8   : > { %499 = sbr.rel (%p496_p3) target bundleno = 450 (0x1c2), region = 80 }
   0xd   : > { %v599_v1 = vld [vmem:[%s1360_s7] sm:$0x7]  ;;  %vm604_vm0 = vcmask 1041408   ;;  %vm605_vm1 = vcmask 1042432   ;;  %vm651_vm2 = vcmask 1040384   ;;  %v1147_v2 = vmov 65535  }
   0xe   : > { %v606_v3 = vsel %vm604_vm0, 4294967295, %v1147_v2  ;;  %v596_v4 = vld [vmem:[%s1358_s5] sm:$0x7]  ;;  %s1374_s20 = smov (!%p563_p4, %s1137_s20), 1  ;;  %vm600_vm3 = vcmask 39936   ;;  %vm624_vm4 = vcmask 48128  }
   0xf   : > { %v646_v5 = vld [vmem:[%s1362_s9] sm:$0x1]  ;;  %v607_v6 = vsel %vm605_vm1, %v606_v3, 0  ;;  %v629_v7 = vsel %vm605_vm1, %v596_v4, 0  ;;  %s568_s23 = scalar_lea.vmem %s1354_s1, %s1374_s20  ;;  %s565_s26 = scalar_lea.vmem %s1353_s0, %s1374_s20  ;;  %vm647_vm5 = vcmask 15360   ;;  %v1087_v24 = vld [vmem:[%s1364_s11 + $0x38] sm:$0xff] }
  0x10   : > { %v653_v8 = vsel %vm651_vm2, %v646_v5, 0  ;;  %v676_v9 = vld [vmem:[%s1361_s8] sm:$0x1]  ;;  %v609_v10 = vand.u32 %v607_v6, %v599_v1  ;;  %638 = vmatpush.bf16.msra.mxu3 %v629_v7  ;;  %s571_s29 = scalar_lea.vmem %s1355_s2, %s1374_s20  ;;  %s1276_s30 = sshll.u32 %s1374_s20, 3  ;;  %787 = vmatpush.bf16.msra.mxu1 %v1087_v24  ;;  %v1086_v25 = vld [vmem:[%s1364_s11 + $0x30] sm:$0xff]  ;;  %v1085_v26 = vld [vmem:[%s1364_s11 + $0x28] sm:$0xff] }
  0x11   : > { %662 = vmatpush.bf16.msra.mxu2 %v653_v8  ;;  %v681_v11 = vsel %vm651_vm2, %v676_v9, 0  ;;  %v673_v12 = vld [vmem:[%s1359_s6] sm:$0x1]  ;;  %s585_s18 = scalar_lea.vmem %s1357_s4, %s1276_s30  ;;  %s578_s24 = scalar_lea.vmem %s1356_s3, %s1276_s30  ;;  %v1083_v28 = vld [vmem:[%s1364_s11 + $0x18] sm:$0xff]  ;;  %v1082_v29 = vld [vmem:[%s1364_s11 + $0x10] sm:$0xff]  ;;  %vm883_vm6 = vcmask 7168  }
  0x12   : > { %v700_v13 = vsel %vm651_vm2, %v673_v12, 0  ;;  %618 = vmatpush.bf16.msra.mxu0 %v609_v10  ;;  %v597_v14 = vld [vmem:[%s568_s23] sm:$0x1]  ;;  %v1081_v30 = vld [vmem:[%s1364_s11 + $0x8] sm:$0xff]  ;;  %v1095_v32 = vld [vmem:[%s1366_s13 + $0x38] sm:$0xff]  ;;  %s592_s20 = scalar_lea.vmem %s1368_s15, %s1276_s30 }
  0x13   : > { %v594_v15 = vld [vmem:[%s565_s26] sm:$0x1]  ;;  %v598_v16 = vpack.c.bf16 %v597_v14, %v597_v14  ;;  %v1094_v34 = vld [vmem:[%s1366_s13 + $0x30] sm:$0xff]  ;;  %v1093_v35 = vld [vmem:[%s1366_s13 + $0x28] sm:$0xff] }
  0x14   : > { %690 = vmatpush.bf16.msrb.mxu3 %v681_v11  ;;  %v595_v17 = vpack.c.bf16 %v594_v15, %v594_v15  ;;  %v644_v18 = vld [vmem:[%s571_s29] sm:$0x1]  ;;  %788 = vmatpush.bf16.msra.mxu1 %v1086_v25  ;;  %v1091_v41 = vld [vmem:[%s1366_s13 + $0x18] sm:$0xff]  ;;  %v1090_v47 = vld [vmem:[%s1366_s13 + $0x10] sm:$0xff] }
  0x15   : > { %v645_v19 = vpack.c.bf16 %v644_v18, %v644_v18  ;;  %1009 = vmatmul.msk.bf16.vlgmr.msra.gmra.mxu0 %vm600_vm3, %v598_v16  ;;  %v674_v20 = vld [vmem:[%s585_s18] sm:$0xff]  ;;  %870 = vmatpush.bf16.msrb.mxu2 %v1095_v32  ;;  %v1089_v57 = vld [vmem:[%s1366_s13 + $0x8] sm:$0xff] }
  0x16   : > { %709 = vmatpush.bf16.msrb.mxu0 %v700_v13  ;;  %1010 = vmatmul.msk.bf16.vlgmr.msra.gmra.mxu3 %vm624_vm4, %v595_v17  ;;  %v671_v21 = vld [vmem:[%s578_s24] sm:$0xff]  ;;  %v675_v22 = vpack.c.bf16 %v674_v20, %v674_v20 }
  0x17   : > { %1011 = vmatmul.msk.bf16.vlgmr.msra.gmra.mxu2 %vm647_vm5, %v645_v19  ;;  %v672_v23 = vpack.c.bf16 %v671_v21, %v671_v21  ;;  %v1084_v27 = vld [vmem:[%s1364_s11 + $0x20] sm:$0xff] }
  0x18   : > { %789 = vmatpush.bf16.msra.mxu1 %v1085_v26  ;;  %v1080_v31 = vld [vmem:[%s1364_s11] sm:$0xff] }
  0x19   : > { %871 = vmatpush.bf16.msrb.mxu2 %v1094_v34  ;;  %v1092_v39 = vld [vmem:[%s1366_s13 + $0x20] sm:$0xff] }
  0x1a   : > { %v669_v45 = vld [vmem:[%s1363_s10] sm:$0x1] }
  0x1b   : > { %v1088_v58 = vld [vmem:[%s1366_s13] sm:$0xff] }
  0x1c   : > { %790 = vmatpush.bf16.msra.mxu1 %v1084_v27  ;;  %v1121_v59 = vld [vmem:[%s1365_s12] ss:$0 sm:$0xff] }
  0x1d   : > { %872 = vmatpush.bf16.msrb.mxu2 %v1093_v35  ;;  %v1122_v1 = vld [vmem:[#allocation2] ss:$0 sm:$0xff] }
  0x20   : > { %791 = vmatpush.bf16.msra.mxu1 %v1083_v28 }
  0x21   : > { %873 = vmatpush.bf16.msrb.mxu2 %v1092_v39 }
  0x24   : > { %792 = vmatpush.bf16.msra.mxu1 %v1082_v29 }
  0x25   : > { %1013 = vmatmul.msk.bf16.vlgmr.msrb.gmra.mxu0 %vm647_vm5, %v672_v23  ;;  %874 = vmatpush.bf16.msrb.mxu2 %v1091_v41 }
  0x26   : > { %1012 = vmatmul.msk.bf16.vlgmr.msrb.gmra.mxu3 %vm647_vm5, %v675_v22 }
  0x28   : > { %793 = vmatpush.bf16.msra.mxu1 %v1081_v30 }
  0x29   : > { %875 = vmatpush.bf16.msrb.mxu2 %v1090_v47 }
  0x2c   : > { %794 = vmatpush.bf16.msra.mxu1 %v1080_v31 }
  0x2d   : > { %876 = vmatpush.bf16.msrb.mxu2 %v1089_v57 }
  0x31   : > { %877 = vmatpush.bf16.msrb.mxu2 %v1088_v58 }
  0x92   : > { %v620_v33 = vpop.f32.mrf.mxu0 }
  0x99   : > { %v640_v36 = vpop.f32.mrf.mxu3 }
  0x9a   : > { %v664_v37 = vpop.f32.mrf.mxu2  ;;  %v622_v38 = vpop.f32.mrf.mxu0  ;;  %v641_v40 = vadd.f32 %v640_v36, %v620_v33 }
  0x9c   : > { %v668_v43 = vadd.f32 %v664_v37, %v641_v40 }
  0x9e   : > { %v670_v48 = vadd.f32 %v669_v45, %v668_v43 }
  0xa0   : > { %v715_v50 = vperm.slane %v670_v48, 0 }
  0xa1   : > { %v642_v42 = vpop.f32.mrf.mxu3 }
  0xa2   : > { %v666_v44 = vpop.f32.mrf.mxu2  ;;  %v711_v46 = vpop.f32.mrf.mxu0 }
  0xa9   : > { %v692_v49 = vpop.f32.mrf.mxu3 }
  0xaa   : > { %v712_v51 = vadd.f32 %v711_v46, %v692_v49  ;;  %v713_v52 = vpop.f32.mrf.mxu0 }
  0xac   : > { %v716_v53 = vadd.f32 %v715_v50, %v712_v51 }
  0xae   : > { %v717_v54 = vmax.f32 %v716_v53, 0.0 }
  0xb0   : > { %v718_v55 = vpack.c.bf16 %v717_v54, %v717_v54 }
  0xb1   : > { %v694_v56 = vpop.f32.mrf.mxu3 }
  0xb2   : > { %795 = vmatmul.bf16.vlgmr.msra.gmra.mxu1 %v718_v55 }
 0x12f   : > { %v796_v60 = vpop.f32.mrf.mxu1 }
 0x130   : > { %v797_v61 = vadd.f32 %v1121_v59, %v796_v60 }
 0x132   : > { %v800_v62 = vmax.f32 %v797_v61, 0.0 }
 0x134   : > { %v801_v63 = vpack.c.bf16 %v800_v62, %v800_v62 }
 0x136   : > { %878 = vmatmul.bf16.vlgmr.msrb.gmra.mxu2 %v801_v63 }
 0x137   : > { %v798_v0 = vpop.f32.mrf.mxu1 }
 0x1b9   : > { %v879_v2 = vpop.f32.mrf.mxu2 }
 0x1ba   : > { %v880_v3 = vadd.f32 %v1122_v1, %v879_v2 }
 0x1bc   : > { %884 = vst.msk [vmem:[%s592_s20] sm:$0xff] %vm883_vm6, %v880_v3 }
 0x1c1   : > { %v881_v4 = vpop.f32.mrf.mxu2 }
 0x1c2 PF: > { %s27_s22 = sadd.s32 1, %s1145_s22   ;;  %s1369_s20 = smov %s1141_s21 }
 0x1c3   : > { %p24_p5 = scmp.ge.s32.totalorder %s27_s22, 4   ;;  %s1370_s21 = smov %s1372_s14 }
 0x1c5   :  { %26 = sbr.rel (!%p24_p5) target bundleno = 3 (0x3), region = 122 }

</bundles_post_ra>
